<compile_context>
chip_gen: v6e
topology: v6e:2x2x1
jax: 0.10.0
libtpu: 0.0.40
codegen_flags: <defaults>
</compile_context>

<pallas_src>
import functools

import jax
import jax.numpy as jnp
from jax.experimental import pallas as pl
from jax.experimental.pallas import tpu as pltpu


def _round_up(x: int, m: int) -> int:
    return ((x + m - 1) // m) * m


def _fused_proto_kernel(x_ref, wt_ref, o_ref):
    # x_ref : [tm, D_pad], wt_ref : [D_pad, tn], o_ref : [tm, tn]
    o_ref[...] = jnp.dot(
        x_ref[...], wt_ref[...], preferred_element_type=jnp.float32
    ).astype(o_ref.dtype)


@functools.partial(jax.jit, static_argnames=("use_bf16",))
def multi_prototypes_matmul(x, w_cat_t, *, use_bf16=False):
    """Fused multi-head prototype matmul: x [B, D] @ w_cat_t [D, K_cat] -> [B, K_cat]."""
    B, D = x.shape
    Dw, Kc = w_cat_t.shape
    assert D == Dw, f"feature-dim mismatch: {D} vs {Dw}"
    out_dtype = x.dtype

    # Optional bf16 MXU inputs (f32 accumulation kept inside the kernel).
    if use_bf16:
        x = x.astype(jnp.bfloat16)
        w_cat_t = w_cat_t.astype(jnp.bfloat16)

    # Hardware-friendly padded shapes / tile sizes.
    D_pad = _round_up(D, 128)
    tm = 256 if B >= 256 else _round_up(B, 8)      # sublane-aligned batch tile
    B_pad = _round_up(B, tm)
    tn = 256 if Kc >= 256 else 128                 # lane-aligned prototype tile
    K_pad = _round_up(Kc, tn)

    x_p = x
    if (B_pad, D_pad) != (B, D):
        x_p = jnp.zeros((B_pad, D_pad), x.dtype).at[:B, :D].set(x)
    w_p = w_cat_t
    if (D_pad, K_pad) != (D, Kc):
        w_p = jnp.zeros((D_pad, K_pad), w_cat_t.dtype).at[:D, :Kc].set(w_cat_t)

    itemsize = jnp.dtype(x_p.dtype).itemsize
    cost = pl.CostEstimate(
        flops=2 * B_pad * D_pad * K_pad,
        transcendentals=0,
        bytes_accessed=(B_pad * D_pad + D_pad * K_pad + B_pad * K_pad) * itemsize,
    )

    out = pl.pallas_call(
        _fused_proto_kernel,
        out_shape=jax.ShapeDtypeStruct((B_pad, K_pad), out_dtype),
        grid_spec=pltpu.PrefetchScalarGridSpec(
            num_scalar_prefetch=0,
            grid=(B_pad // tm, K_pad // tn),
            in_specs=[
                pl.BlockSpec((tm, D_pad), lambda i, j: (i, 0)),
                pl.BlockSpec((D_pad, tn), lambda i, j: (0, j)),
            ],
            out_specs=pl.BlockSpec((tm, tn), lambda i, j: (i, j)),
        ),
        compiler_params=pltpu.CompilerParams(
            # Both axes independent (D resident per block) -> megacore sharding.
            dimension_semantics=("parallel", "parallel"),
        ),
        cost_estimate=cost,
    )(x_p, w_p)

    # Strip the padding back off.
    return out[:B, :Kc]


class MultiPrototypes:
    """JAX/Pallas port of the PyTorch MultiPrototypes module (all heads fused)."""

    def __init__(self, output_dim, nmb_prototypes, key, dtype=jnp.float32):
        self.nmb_heads = len(nmb_prototypes)
        self.k_sizes = list(nmb_prototypes)
        self.weights = []  # per-head [k_i, D], kept only for reference checks
        bound = 1.0 / (output_dim ** 0.5)  # nn.Linear default: U(+/- 1/sqrt(fan_in))
        for k in nmb_prototypes:
            key, sub = jax.random.split(key)
            w = jax.random.uniform(
                sub, (k, output_dim), dtype=dtype, minval=-bound, maxval=bound
            )
            self.weights.append(w)
        # Pre-transposed + fused once at init: [D, sum(k_i)] (no per-call transpose).
        self.w_cat_t = jnp.concatenate([w.T for w in self.weights], axis=1)

    def __call__(self, x, *, use_bf16=False):
        fused = multi_prototypes_matmul(x, self.w_cat_t, use_bf16=use_bf16)
        outs, off = [], 0
        for k in self.k_sizes:
            outs.append(fused[:, off:off + k])
            off += k
        return outs


if __name__ == "__main__":
    key = jax.random.PRNGKey(0)
    k_x, k_w = jax.random.split(key)

    batch = 8
    output_dim = 32
    nmb_prototypes = [16, 24]

    x = jax.random.normal(k_x, (batch, output_dim), dtype=jnp.float32)

    module = MultiPrototypes(output_dim, nmb_prototypes, k_w)
    outs = module(x)
    outs = [jax.block_until_ready(o) for o in outs]

    # Correctness check vs plain JAX reference (x @ W_i^T per head).
    for o, w in zip(outs, module.weights):
        ref = x @ w.T
        assert o.shape == ref.shape, (o.shape, ref.shape)
        assert jnp.allclose(o, ref, atol=1e-5, rtol=1e-5), "mismatch vs reference"

    print("KERNEL_OK")
</pallas_src>

<mosaic_0001>
module attributes {stable_mosaic.version = 11 : i64} {
  func.func @_fused_proto_kernel(%arg0: i32, %arg1: i32, %arg2: memref<8x128xf32, #tpu.memory_space<vmem>>, %arg3: memref<128x128xf32, #tpu.memory_space<vmem>>, %arg4: memref<8x128xf32, #tpu.memory_space<vmem>>) attributes {dimension_semantics = [#tpu.dimension_semantics<parallel>, #tpu.dimension_semantics<parallel>], iteration_bounds = array<i64: 1, 1>, scalar_prefetch = 0 : i64, scratch_operands = 0 : i64, tpu.core_type = #tpu.core_type<tc>, window_params = [{transform_indices = @transform_0, window_bounds = array<i64: 8, 128>}, {transform_indices = @transform_1, window_bounds = array<i64: 128, 128>}, {transform_indices = @transform_2, window_bounds = array<i64: 8, 128>}]} {
    %c0 = arith.constant 0 : index
    %c0_0 = arith.constant 0 : index
    %0 = vector.load %arg2[%c0, %c0_0] : memref<8x128xf32, #tpu.memory_space<vmem>>, vector<8x128xf32>
    %c0_1 = arith.constant 0 : index
    %c0_2 = arith.constant 0 : index
    %1 = vector.load %arg3[%c0_1, %c0_2] : memref<128x128xf32, #tpu.memory_space<vmem>>, vector<128x128xf32>
    %cst = arith.constant dense<0.000000e+00> : vector<8x128xf32>
    %2 = tpu.matmul %0, %1, %cst {dimension_numbers = #tpu.dot_dimension_numbers<[1], [0], [0], [1], [0, 0, 1, 1], [], []>} : vector<8x128xf32>, vector<128x128xf32>, vector<8x128xf32> -> vector<8x128xf32>
    %c0_3 = arith.constant 0 : index
    %c0_4 = arith.constant 0 : index
    %3 = vector.load %arg4[%c0_3, %c0_4] : memref<8x128xf32, #tpu.memory_space<vmem>>, vector<8x128xf32>
    tpu.vector_store %arg4[%c0_3, %c0_4], %2 {strides = array<i32>} : memref<8x128xf32, #tpu.memory_space<vmem>>, vector<8x128xf32>,
    return
  }
  func.func @transform_0(%arg0: i32, %arg1: i32) -> (i32, i32) {
    %c0_i32 = arith.constant 0 : i32
    %c0_i32_0 = arith.constant 0 : i32
    return %arg0, %c0_i32 : i32, i32
  }
  func.func @transform_1(%arg0: i32, %arg1: i32) -> (i32, i32) {
    %c0_i32 = arith.constant 0 : i32
    %c0_i32_0 = arith.constant 0 : i32
    return %c0_i32, %arg1 : i32, i32
  }
  func.func @transform_2(%arg0: i32, %arg1: i32) -> (i32, i32) {
    %c0_i32 = arith.constant 0 : i32
    return %arg0, %arg1 : i32, i32
  }
}

</mosaic_0001>

<bundles_post_ra>
// kernel: multi_prototypes_matmul.1
= control target key start
LH: loop header
LB: loop body
LE: loop exit
PB: predicated region body
PF: predicated region fallthrough
CT: control target
= control target key end

     0   :  { %v191_v1 = vmov 0.0   ;;  %vm192_vm0 = vmmov 0   ;;  %s263_s0 = inlined_call_operand.vmem [shape: f32[8,128], index: 0, kind: input, shape index: {}]   ;;  %s264_s1 = inlined_call_operand.vmem [shape: f32[128,128], index: 1, kind: input, shape index: {}]   ;;  %s265_s2 = inlined_call_operand.hbm [shape: f32[8,128], index: 2, kind: output, shape index: {}]  }
   0x1   :  { %v28_v0 = vld [vmem:[%s264_s1 + $0x78] sm:$0xff]  ;;  %131 = vmatprep.subr.mxu0 %v191_v1  ;;  %v27_v2 = vld [vmem:[%s264_s1 + $0x70] sm:$0xff]  ;;  %163 = vmatprep.mubr.msk.f32.mxu0 %vm192_vm0, %v191_v1  ;;  %v26_v3 = vld [vmem:[%s264_s1 + $0x68] sm:$0xff] }
   0x2   :  { %132 = vmatpush3.msra.mxu0 %v28_v0  ;;  %v25_v4 = vld [vmem:[%s264_s1 + $0x60] sm:$0xff] }
   0x3   :  { %133 = vmatprep.subr.mxu0 %v191_v1 }
   0x4   :  { %134 = vmatpush3.msra.mxu0 %v27_v2 }
   0x5   :  { %135 = vmatprep.subr.mxu0 %v191_v1 }
   0x6   :  { %7 = vsyncpa [#allocation3], 0  ;;  %136 = vmatpush3.msra.mxu0 %v26_v3  ;;  %v24_v5 = vld [vmem:[%s264_s1 + $0x58] sm:$0xff]  ;;  %v23_v6 = vld [vmem:[%s264_s1 + $0x50] sm:$0xff]  ;;  %s193_s15 = smov [#allocation2]  }
   0x7   :  { %137 = vmatprep.subr.mxu0 %v191_v1  ;;  %v22_v7 = vld [vmem:[%s264_s1 + $0x48] sm:$0xff]  ;;  %v21_v8 = vld [vmem:[%s264_s1 + $0x40] sm:$0xff]  ;;  %v20_v9 = vld [vmem:[%s264_s1 + $0x38] sm:$0xff]  ;;  %s106_s16 = sshll.u32 %s193_s15, 4  ;;  %s107_s16 = int_to_ptr.vmem [resolvable:$true] %s106_s16 }
   0x8   :  { %138 = vmatpush3.msra.mxu0 %v25_v4  ;;  %v19_v10 = vld [vmem:[%s264_s1 + $0x30] sm:$0xff]  ;;  %v18_v11 = vld [vmem:[%s264_s1 + $0x28] sm:$0xff]  ;;  %v17_v12 = vld [vmem:[%s264_s1 + $0x20] sm:$0xff]  ;;  %s169_s17 = scalar_lea.vmem %s107_s16, 128  ;;  %p174_p1 = scmp.lt.s32.totalorder %s107_s16, %s107_s16 }
   0x9   :  { %139 = vmatprep.subr.mxu0 %v191_v1  ;;  %v16_v13 = vld [vmem:[%s264_s1 + $0x18] sm:$0xff]  ;;  %v15_v14 = vld [vmem:[%s264_s1 + $0x10] sm:$0xff]  ;;  %v14_v15 = vld [vmem:[%s264_s1 + $0x8] sm:$0xff]  ;;  %p170_p0 = scmp.ne.s32.totalorder %s107_s16, %s169_s17  ;;  %p175_p2 = scmp.lt.s32.totalorder %s169_s17, %s169_s17 }
   0xa   :  { %140 = vmatpush3.msra.mxu0 %v24_v5  ;;  %v13_v16 = vld [vmem:[%s264_s1] sm:$0xff] }
   0xb   :  { %141 = vmatprep.subr.mxu0 %v191_v1  ;;  %v12_v17 = vld [vmem:[%s263_s0] sm:$0xff]  ;;  %p176_p3 = por %p175_p2, %p174_p1 }
   0xc   :  { %142 = vmatpush3.msra.mxu0 %v23_v6 }
   0xd   :  { %143 = vmatprep.subr.mxu0 %v191_v1  ;;  %p177_p4 = pnand %p176_p3, %p170_p0 }
   0xe   :  { %144 = vmatpush3.msra.mxu0 %v22_v7 }
   0xf   :  { %145 = vmatprep.subr.mxu0 %v191_v1 }
  0x10   :  { %146 = vmatpush3.msra.mxu0 %v21_v8 }
  0x11   :  { %147 = vmatprep.subr.mxu0 %v191_v1 }
  0x12   :  { %148 = vmatpush3.msra.mxu0 %v20_v9 }
  0x13   :  { %149 = vmatprep.subr.mxu0 %v191_v1 }
  0x14   :  { %150 = vmatpush3.msra.mxu0 %v19_v10 }
  0x15   :  { %151 = vmatprep.subr.mxu0 %v191_v1 }
  0x16   :  { %152 = vmatpush3.msra.mxu0 %v18_v11 }
  0x17   :  { %153 = vmatprep.subr.mxu0 %v191_v1 }
  0x18   :  { %154 = vmatpush3.msra.mxu0 %v17_v12 }
  0x19   :  { %155 = vmatprep.subr.mxu0 %v191_v1 }
  0x1a   :  { %156 = vmatpush3.msra.mxu0 %v16_v13 }
  0x1b   :  { %157 = vmatprep.subr.mxu0 %v191_v1 }
  0x1c   :  { %158 = vmatpush3.msra.mxu0 %v15_v14 }
  0x1d   :  { %159 = vmatprep.subr.mxu0 %v191_v1 }
  0x1e   :  { %160 = vmatpush3.msra.mxu0 %v14_v15 }
  0x1f   :  { %161 = vmatprep.subr.mxu0 %v191_v1 }
  0x20   :  { %162 = vmatpush3.msra.mxu0 %v13_v16 }
  0x21   :  { %164 = vmatmul.mubr.f32.vlgmr.msra.gmra.mxu0 %v12_v17 }
  0xe1   :  { %v95_v18 = vpop.f32.mrf.mxu0 }
  0xe2   :  { %99 = vst [vmem:[#allocation2] sm:$0xff] %v95_v18 }
  0xe3   :  { %v165_v19 = vpop.f32.mrf.mxu0 }
  0xe4   :  { %180 = shalt.err (!%p177_p4)
}
  0xe5   :  { %109 = dma.vmem_to_hbm [thread:$0]  %s107_s16, 128, %s265_s2, [#allocation3]  }
  0xe6   :  { %189 = dma.done.wait [#allocation3], 128  }
  0xe7   :  { %190 = vsyncadd [#allocation3], 4294967168 }
  0xe8   :  { %113 = vsyncpa [#allocation3], 1 }

</bundles_post_ra>
